<compile_context>
chip_gen: v7x
topology: tpu7x:2x2x1
jax: 0.10.0
libtpu: 0.0.40
codegen_flags: <defaults>
</compile_context>

<pallas_src>
import jax
import jax.numpy as jnp
from jax.experimental import pallas as pl
from jax.experimental.pallas import tpu as pltpu

_LANES = (1024, 512, 256, 128)   # lane-dense last-dim candidates (multiples of 128)
_SUBLANE = 8                     # sublane granularity for the (8, 128) tiling rule


def _tpu_generation():
    """Best-effort TPU generation tag ('v5' / 'v6' / 'v7') or None."""
    try:
        kind = jax.devices()[0].device_kind.lower()
    except Exception:
        return None
    for tag in ("v7", "v6", "v5"):
        if tag in kind:
            return tag
    return None


def _make_tanh_kernel(compute_f32: bool):
    def kernel(x_ref, o_ref):
        x = x_ref[...]
        if compute_f32:
            x = x.astype(jnp.float32)
        # Single EUP transcendental per vreg; VALU is nearly idle (HBM-bound).
        o_ref[...] = jnp.tanh(x).astype(o_ref.dtype)
    return kernel


def tanh_pallas(x: jax.Array, *, target_block_bytes: int | None = None,
                min_pallas_bytes: int = 1 << 20) -> jax.Array:
    """Elementwise Tanh via Pallas. Accepts any shape; I/O stays in x.dtype."""
    orig_shape = x.shape
    dtype = x.dtype
    n = x.size
    if n == 0:
        return x

    elem_bytes = jnp.dtype(dtype).itemsize
    gen = _tpu_generation()

    # Tiny inputs: fixed pallas_call / reshape overhead dominates; fused XLA
    # tanh is strictly faster on every generation.
    if n * elem_bytes < min_pallas_bytes:
        return jnp.tanh(x)

    if target_block_bytes is None:
        # v7x HBM (~3.2 TB/s) makes the ~0.35 us per-grid-step overhead worth
        # more bytes, so use bigger blocks there; 2 MiB is enough on v5e/v6e.
        target_block_bytes = (4 << 20) if gen == "v7" else (2 << 20)

    # bf16 EUP/VPU exist on v6e/v7x -> compute in bf16 there; upcast elsewhere.
    compute_f32 = not (dtype == jnp.bfloat16 and gen in ("v6", "v7"))

    xflat = x.reshape(-1)

    # Lane width: largest candidate dividing n -> no pad needed (common case).
    lane = None
    for cand in _LANES:
        if n % cand == 0:
            lane = cand
            break
    pad = 0
    if lane is None:
        # Only when n % 128 != 0: pad with zeros (tanh(0) = 0, sliced off below).
        lane = _LANES[0]
        pad = (-n) % lane
        xflat = jnp.pad(xflat, (0, pad))
    total = n + pad
    rows = total // lane

    # Tile rows: as large as the byte target allows, but keep enough grid
    # steps for the double-buffer pipeline to hide DMA (>=4; >=8 & even on v7x).
    if rows <= _SUBLANE:
        tile_rows = rows                      # block equals full array dim -> legal
    else:
        max_rows_by_bytes = max(
            _SUBLANE,
            (target_block_bytes // (lane * elem_bytes)) // _SUBLANE * _SUBLANE,
        )
        min_steps = 8 if gen == "v7" else 4
        cap_for_steps = max(
            _SUBLANE,
            (pl.cdiv(rows, min_steps) // _SUBLANE) * _SUBLANE,
        )
        tile_rows = max(_SUBLANE, min(max_rows_by_bytes, cap_for_steps, rows))
        if gen == "v7":
            # Even grid so the "parallel" axis shards evenly across the 2 TCs.
            while tile_rows > _SUBLANE and pl.cdiv(rows, tile_rows) % 2 == 1:
                tile_rows -= _SUBLANE

    grid = (pl.cdiv(rows, tile_rows),)
    x2d = xflat.reshape(rows, lane)

    out = pl.pallas_call(
        _make_tanh_kernel(compute_f32),
        out_shape=jax.ShapeDtypeStruct((rows, lane), dtype),
        grid_spec=pltpu.PrefetchScalarGridSpec(
            num_scalar_prefetch=0,
            grid=grid,
            in_specs=[pl.BlockSpec((tile_rows, lane), lambda i: (i, 0))],
            out_specs=pl.BlockSpec((tile_rows, lane), lambda i: (i, 0)),
        ),
        compiler_params=pltpu.CompilerParams(
            dimension_semantics=("parallel",),
            vmem_limit_bytes=32 * 1024 * 1024,
        ),
    )(x2d)

    out = out.reshape(-1)
    if pad:
        out = out[:n]
    return out.reshape(orig_shape)


if __name__ == "__main__":
    key = jax.random.PRNGKey(0)
    k1, k2, k3 = jax.random.split(key, 3)

    def ref_tanh(v):
        return 2.0 * (1.0 / (1.0 + jnp.exp(-2.0 * v))) - 1.0

    # 1) Tiny MLP-activation shape (batch=2, hidden=32). Force the Pallas path
    #    (exercises the pad fallback since 64 % 128 != 0).
    x1 = jax.random.normal(k1, (2, 32), dtype=jnp.float32)
    y1 = tanh_pallas(x1, min_pallas_bytes=0)
    jax.block_until_ready(y1)
    assert y1.shape == x1.shape and y1.dtype == x1.dtype
    assert jnp.allclose(y1, ref_tanh(x1), atol=1e-6), "mismatch (tiny)"

    # 2) Pad-free path: n is a multiple of 1024 -> lane = 1024, no extra HBM pass.
    x2 = jax.random.normal(k2, (64, 512), dtype=jnp.float32)
    y2 = tanh_pallas(x2, min_pallas_bytes=0)
    jax.block_until_ready(y2)
    assert jnp.allclose(y2, ref_tanh(x2), atol=1e-6), "mismatch (pad-free)"

    # 3) Awkward element count (n = 16000 = 125 * 128): lane = 128, rows = 125,
    #    cdiv grid with a partial last block and no padding.
    x3 = jax.random.normal(k3, (16, 125, 8), dtype=jnp.float32)
    y3 = tanh_pallas(x3, min_pallas_bytes=0)
    jax.block_until_ready(y3)
    assert jnp.allclose(y3, ref_tanh(x3), atol=1e-6), "mismatch (partial block)"

    # 4) Default small-input fallback path (semantics only; no Pallas call).
    y1b = tanh_pallas(x1)
    jax.block_until_ready(y1b)
    assert jnp.allclose(y1b, ref_tanh(x1), atol=1e-6), "mismatch (fallback)"

    print("KERNEL_OK")
</pallas_src>

<mosaic_0001>
module attributes {stable_mosaic.version = 11 : i64} {
  func.func @kernel(%arg0: i32, %arg1: memref<1x1024xf32, #tpu.memory_space<vmem>>, %arg2: memref<1x1024xf32, #tpu.memory_space<vmem>>) attributes {dimension_semantics = [#tpu.dimension_semantics<parallel>], iteration_bounds = array<i64: 1>, scalar_prefetch = 0 : i64, scratch_operands = 0 : i64, tpu.core_type = #tpu.core_type<tc>, window_params = [{transform_indices = @transform_0, window_bounds = array<i64: 1, 1024>}, {transform_indices = @transform_1, window_bounds = array<i64: 1, 1024>}]} {
    %c0 = arith.constant 0 : index
    %c0_0 = arith.constant 0 : index
    %0 = vector.load %arg1[%c0, %c0_0] : memref<1x1024xf32, #tpu.memory_space<vmem>>, vector<1x1024xf32>
    %1 = math.tanh %0 : vector<1x1024xf32>
    %c0_1 = arith.constant 0 : index
    %c0_2 = arith.constant 0 : index
    %2 = vector.load %arg2[%c0_1, %c0_2] : memref<1x1024xf32, #tpu.memory_space<vmem>>, vector<1x1024xf32>
    tpu.vector_store %arg2[%c0_1, %c0_2], %1 {strides = array<i32>} : memref<1x1024xf32, #tpu.memory_space<vmem>>, vector<1x1024xf32>,
    return
  }
  func.func @transform_0(%arg0: i32) -> (i32, i32) {
    %c0_i32 = arith.constant 0 : i32
    %c0_i32_0 = arith.constant 0 : i32
    return %arg0, %c0_i32 : i32, i32
  }
  func.func @transform_1(%arg0: i32) -> (i32, i32) {
    %c0_i32 = arith.constant 0 : i32
    %c0_i32_0 = arith.constant 0 : i32
    return %arg0, %c0_i32 : i32, i32
  }
}

</mosaic_0001>

<bundles_post_ra>
// kernel: tpu_custom_call.1
= control target key start
LH: loop header
LB: loop body
LE: loop exit
PB: predicated region body
PF: predicated region fallthrough
CT: control target
= control target key end

     0   :  { %6 = vsyncpa [#allocation3], 0  ;;  %s127_s0 = inlined_call_operand.hbm [shape: f32[1,1024], index: 0, kind: input, shape index: {}]   ;;  %s128_s1 = inlined_call_operand.hbm [shape: f32[1,1024], index: 1, kind: output, shape index: {}]  }
   0x1   :  { %7 = vsyncpa [#allocation4], 0  ;;  %s91_s6 = smov [#allocation2]   ;;  %s43_s10 = scalar_lea.hbm %s127_s0, 128 }
   0x2   :  { %s14_s7 = sshll.u32 %s91_s6, 4  ;;  %p44_p0 = scmp.ne.s32.totalorder %s127_s0, %s43_s10  ;;  %s15_s7 = int_to_ptr.vmem [resolvable:$true] %s14_s7 }
   0x3   :  { %p47_p1 = scmp.lt.u32.totalorder %s43_s10, %s127_s0 }
   0x5   :  { %p49_p2 = pnand %p47_p1, %p44_p0 }
   0x7   :  { %52 = shalt.err (!%p49_p2)
}
   0x8   :  { %s53_s15 = scalar_lea.vmem %s15_s7, 128  ;;  %p58_p4 = scmp.lt.s32.totalorder %s15_s7, %s15_s7 }
   0x9   :  { %p54_p3 = scmp.ne.s32.totalorder %s15_s7, %s53_s15  ;;  %p59_p5 = scmp.lt.s32.totalorder %s53_s15, %s53_s15 }
   0xb   :  { %p60_p6 = por %p59_p5, %p58_p4 }
   0xd   :  { %p61_p7 = pnand %p60_p6, %p54_p3 }
   0xf   :  { %64 = shalt.err (!%p61_p7)
}
  0x10   :  { %17 = dma.hbm_to_vmem [thread:$0]  %s127_s0, 128, %s15_s7, [#allocation3]  }
  0x11   :  { %87 = dma.done.wait [#allocation3], 128  }
  0x12   :  { %88 = vsyncadd [#allocation3], 4294967168  ;;  %v21_v0 = vld [vmem:[#allocation2] sm:$0xff]  ;;  %s92_s18 = smov [#allocation5]  }
  0x13   :  { %41 = vtanh.f32 %v21_v0  ;;  %s30_s19 = sshll.u32 %s92_s18, 4  ;;  %s31_s19 = int_to_ptr.vmem [resolvable:$true] %s30_s19 }
  0x14   :  { %s65_s20 = scalar_lea.vmem %s31_s19, 128  ;;  %p70_p9 = scmp.lt.s32.totalorder %s31_s19, %s31_s19 }
  0x15   :  { %p66_p8 = scmp.ne.s32.totalorder %s31_s19, %s65_s20  ;;  %p71_p10 = scmp.lt.s32.totalorder %s65_s20, %s65_s20 }
  0x17   :  { %p72_p11 = por %p71_p10, %p70_p9 }
  0x19   :  { %p73_p12 = pnand %p72_p11, %p66_p8 }
  0x1d   :  { %v42_v1 = vpop.eup %41 }
  0x1e   :  { %23 = vst [vmem:[#allocation5] sm:$0xff] %v42_v1 }
  0x1f   :  { %76 = shalt.err (!%p73_p12)
}
  0x20   :  { %s77_s0 = scalar_lea.hbm %s128_s1, 128 }
  0x21   :  { %p78_p13 = scmp.ne.s32.totalorder %s128_s1, %s77_s0  ;;  %p81_p0 = scmp.lt.u32.totalorder %s77_s0, %s128_s1 }
  0x23   :  { %p83_p1 = pnand %p81_p0, %p78_p13 }
  0x25   :  { %86 = shalt.err (!%p83_p1)
}
  0x26   :  { %33 = dma.vmem_to_hbm [thread:$0]  %s31_s19, 128, %s128_s1, [#allocation4]  }
  0x27   :  { %89 = dma.done.wait [#allocation4], 128  }
  0x28   :  { %90 = vsyncadd [#allocation4], 4294967168 }
  0x29   :  { %37 = vsyncpa [#allocation3], 1 }
  0x2a   :  { %38 = vsyncpa [#allocation4], 1 }

</bundles_post_ra>
